<compile_context>
chip_gen: v5e
topology: v5e:2x2
jax: 0.10.0
libtpu: 0.0.40
codegen_flags: <defaults>
</compile_context>

<pallas_src>
import functools

import jax
import jax.numpy as jnp
from jax.experimental import pallas as pl
from jax.experimental.pallas import tpu as pltpu

BN_EPS = 1e-5


def critic_kernel(state_ref, action_ref, w_in_ref, w_mid_ref, vec_ref, out_ref,
                  *, s_size, a_size, h2, h3):
    # Operand layout (all prepared once, outside the forward):
    #   w_in_ref  : (s_size + a_size, H1) bf16, rows [0:s_size] = w1,
    #                                           rows [s_size:]  = w2a
    #   w_mid_ref : (H1, h2 + h3) bf16, cols [0:h2] = w2s, cols [h2:] = w3
    #   vec_ref   : (8, H1) f32
    #      0: b1   1: gamma   2: beta   3: b2
    #      4: b3 (first h3 lanes)   5: final_linear weight row (first h3 lanes)
    #      6: b4 (lane 0)           7: zero padding
    state = state_ref[...]                       # (B, S) f32
    action = action_ref[...]                     # (B, A) f32
    B = state.shape[0]

    b1 = vec_ref[0:1, :]
    gamma = vec_ref[1:2, :]
    beta = vec_ref[2:3, :]
    b2 = vec_ref[3:4, 0:h2]
    b3 = vec_ref[4:5, 0:h3]
    w4row = vec_ref[5:6, 0:h3]
    b4 = vec_ref[6:7, 0:1]

    # --- state stream: Linear -> BatchNorm1d (train-mode batch stats) -> ReLU ---
    h = jnp.dot(state.astype(jnp.bfloat16), w_in_ref[0:s_size, :],
                preferred_element_type=jnp.float32) + b1
    # One-pass BN stats: sum and sum-of-squares are independent reductions
    # (can dual-issue on the XLUs) instead of the serial mean->centered->var chain.
    inv_b = 1.0 / B
    mean = jnp.sum(h, axis=0, keepdims=True) * inv_b
    mean_sq = jnp.sum(h * h, axis=0, keepdims=True) * inv_b
    var = jnp.maximum(mean_sq - mean * mean, 0.0)        # biased variance
    scale = gamma * jax.lax.rsqrt(var + BN_EPS)          # gamma folded into rsqrt
    shift = beta - mean * scale
    h = jnp.maximum(h * scale + shift, 0.0)

    # --- final stream: concat(h, action) fused via the split first-layer weight ---
    y = (jnp.dot(h.astype(jnp.bfloat16), w_mid_ref[:, 0:h2],
                 preferred_element_type=jnp.float32)
         + jnp.dot(action.astype(jnp.bfloat16),
                   w_in_ref[s_size:s_size + a_size, :],
                   preferred_element_type=jnp.float32)
         + b2)
    y = jnp.maximum(y, 0.0)

    z = jnp.dot(y.astype(jnp.bfloat16), w_mid_ref[:, h2:h2 + h3],
                preferred_element_type=jnp.float32) + b3
    z = jnp.maximum(z, 0.0)

    # --- final_linear (out=1): VPU multiply + lane reduce, no N=1 MXU matmul ---
    q = jnp.sum(z * w4row, axis=-1, keepdims=True) + b4
    out_ref[...] = q.astype(out_ref.dtype)


def prepare_params(params):
    """One-time packing of the f32 module parameters into the kernel operand
    layout.  Call at init / after every parameter update — NOT per forward —
    so the bf16 casts and slab concatenations stay off the latency-critical
    forward path and each call issues only 5 input DMAs."""
    (w1, b1, gamma, beta, w2s, w2a, b2, w3, b3, w4, b4) = params
    s_size, H1 = w1.shape
    a_size, h2a = w2a.shape
    H2 = w2s.shape[1]
    H3 = w3.shape[1]
    out_size = w4.shape[1]
    # Packing w1 and w2a into one sublane-concatenated slab (and b2 into the
    # H1-wide vec slab) requires the state hidden width to equal the first
    # final-layer width — true for the default config (both 256).
    assert w2s.shape[0] == H1 and w3.shape[0] == H2
    assert H1 == H2 and h2a == H2

    w_in = jnp.concatenate([w1, w2a], axis=0).astype(jnp.bfloat16)    # (S+A, H1)
    w_mid = jnp.concatenate([w2s, w3], axis=1).astype(jnp.bfloat16)   # (H1, H2+H3)

    def pad_row(v):
        v = v.reshape(1, -1).astype(jnp.float32)
        return jnp.pad(v, ((0, 0), (0, H1 - v.shape[1])))

    vec = jnp.concatenate(
        [pad_row(b1), pad_row(gamma), pad_row(beta), pad_row(b2),
         pad_row(b3), pad_row(w4.reshape(1, -1)), pad_row(b4),
         jnp.zeros((1, H1), jnp.float32)],
        axis=0)                                                        # (8, H1)

    dims = dict(s_size=int(s_size), a_size=int(a_size),
                h2=int(H2), h3=int(H3), out_size=int(out_size))
    return (w_in, w_mid, vec), dims


def maddpg_critic_forward(state, action, packed, dims):
    """Latency-path forward: no per-call param prep, single fused pallas_call."""
    w_in, w_mid, vec = packed
    B = state.shape[0]

    def vmem():
        return pl.BlockSpec(memory_space=pltpu.MemorySpace.VMEM)

    return pl.pallas_call(
        functools.partial(critic_kernel,
                          s_size=dims["s_size"], a_size=dims["a_size"],
                          h2=dims["h2"], h3=dims["h3"]),
        out_shape=jax.ShapeDtypeStruct((B, dims["out_size"]), jnp.float32),
        in_specs=[vmem() for _ in range(5)],
        out_specs=vmem(),
    )(state, action, w_in, w_mid, vec)


def init_params(key, state_size, act_size,
                state_hidden=256, final_hidden=(256, 128), output_size=1):
    """Deterministic init mirroring the module's init_custom=True scheme
    (uniform +/- 1/sqrt(weight.size(0)) == 1/sqrt(out_features))."""
    ks = jax.random.split(key, 11)

    def u(k, shape, lim):
        return jax.random.uniform(k, shape, jnp.float32, -lim, lim)

    H1, H2, H3 = state_hidden, final_hidden[0], final_hidden[1]
    lim1 = 1.0 / jnp.sqrt(H1)
    lim2 = 1.0 / jnp.sqrt(H2)
    lim3 = 1.0 / jnp.sqrt(H3)

    w1 = u(ks[0], (state_size, H1), lim1)        # Linear(state, 256), stored [in,out]
    b1 = u(ks[1], (1, H1), lim1)
    gamma = u(ks[2], (1, H1), lim1)              # BatchNorm1d weight (init_layers overrides)
    beta = u(ks[3], (1, H1), lim1)               # BatchNorm1d bias

    w2s = u(ks[4], (H1, H2), lim2)               # first 256 rows of Linear(256+act, 256)
    w2a = u(ks[5], (act_size, H2), lim2)         # last act_size rows (fused concat)
    b2 = u(ks[6], (1, H2), lim2)

    w3 = u(ks[7], (H2, H3), lim3)                # Linear(256, 128)
    b3 = u(ks[8], (1, H3), lim3)

    w4 = u(ks[9], (H3, output_size), 0.003)      # final_linear: uniform(-3e-3, 3e-3)
    b4 = u(ks[10], (1, output_size), 0.003)

    return (w1, b1, gamma, beta, w2s, w2a, b2, w3, b3, w4, b4)


def reference_forward_f32(state, action, params):
    """True f32 PyTorch semantics (train-mode BatchNorm1d, biased variance)."""
    (w1, b1, gamma, beta, w2s, w2a, b2, w3, b3, w4, b4) = params
    h = state @ w1 + b1
    mean = jnp.mean(h, axis=0, keepdims=True)
    var = jnp.mean((h - mean) ** 2, axis=0, keepdims=True)
    h = jnp.maximum((h - mean) * jax.lax.rsqrt(var + BN_EPS) * gamma + beta, 0.0)
    y = jnp.maximum(h @ w2s + action @ w2a + b2, 0.0)
    z = jnp.maximum(y @ w3 + b3, 0.0)
    return z @ w4 + b4


def reference_forward_bf16(state, action, params):
    """Pure-JAX reference using the same bf16-weight / f32-accumulate arithmetic
    and one-pass BN statistics the kernel uses."""
    (w1, b1, gamma, beta, w2s, w2a, b2, w3, b3, w4, b4) = params
    bf = jnp.bfloat16
    B = state.shape[0]
    h = jnp.dot(state.astype(bf), w1.astype(bf),
                preferred_element_type=jnp.float32) + b1
    mean = jnp.sum(h, axis=0, keepdims=True) / B
    var = jnp.maximum(jnp.sum(h * h, axis=0, keepdims=True) / B - mean * mean, 0.0)
    scale = gamma * jax.lax.rsqrt(var + BN_EPS)
    h = jnp.maximum(h * scale + (beta - mean * scale), 0.0)
    y = (jnp.dot(h.astype(bf), w2s.astype(bf), preferred_element_type=jnp.float32)
         + jnp.dot(action.astype(bf), w2a.astype(bf), preferred_element_type=jnp.float32)
         + b2)
    y = jnp.maximum(y, 0.0)
    z = jnp.maximum(
        jnp.dot(y.astype(bf), w3.astype(bf), preferred_element_type=jnp.float32) + b3,
        0.0)
    return jnp.sum(z * w4.reshape(1, -1), axis=-1, keepdims=True) + b4


if __name__ == "__main__":
    key = jax.random.PRNGKey(0)
    k_s, k_a, k_p = jax.random.split(key, 3)

    B, STATE_SIZE, ACT_SIZE = 8, 32, 8
    state = jax.random.normal(k_s, (B, STATE_SIZE), jnp.float32)
    action = jax.random.normal(k_a, (B, ACT_SIZE), jnp.float32)
    params = init_params(k_p, STATE_SIZE, ACT_SIZE)

    # One-time parameter packing (init / param-update time, not per forward).
    packed, dims = prepare_params(params)
    packed = tuple(jax.block_until_ready(p) for p in packed)

    q = maddpg_critic_forward(state, action, packed, dims)
    q = jax.block_until_ready(q)

    q_bf16 = reference_forward_bf16(state, action, params)   # kernel arithmetic
    q_f32 = reference_forward_f32(state, action, params)     # PyTorch f32 semantics

    assert q.shape == (B, dims["out_size"])
    assert jnp.allclose(q, q_bf16, atol=1e-3, rtol=1e-3)
    assert jnp.allclose(q, q_f32, atol=3e-2, rtol=3e-2)

    print("KERNEL_OK")
</pallas_src>

<mosaic_0001>
module attributes {stable_mosaic.version = 11 : i64} {
  func.func @critic_kernel(%arg0: memref<8x32xf32, #tpu.memory_space<vmem>>, %arg1: memref<8x8xf32, #tpu.memory_space<vmem>>, %arg2: memref<40x256xbf16, #tpu.memory_space<vmem>>, %arg3: memref<256x384xbf16, #tpu.memory_space<vmem>>, %arg4: memref<8x256xf32, #tpu.memory_space<vmem>>, %arg5: memref<8x1xf32, #tpu.memory_space<vmem>>) attributes {dimension_semantics = [], scalar_prefetch = 0 : i64, scratch_operands = 0 : i64, tpu.core_type = #tpu.core_type<tc>} {
    %c0 = arith.constant 0 : index
    %c0_0 = arith.constant 0 : index
    %0 = vector.load %arg0[%c0, %c0_0] : memref<8x32xf32, #tpu.memory_space<vmem>>, vector<8x32xf32>
    %c0_1 = arith.constant 0 : index
    %c0_2 = arith.constant 0 : index
    %1 = vector.load %arg1[%c0_1, %c0_2] : memref<8x8xf32, #tpu.memory_space<vmem>>, vector<8x8xf32>
    %c0_3 = arith.constant 0 : index
    %c0_4 = arith.constant 0 : index
    %2 = vector.load %arg4[%c0_3, %c0_4] : memref<8x256xf32, #tpu.memory_space<vmem>>, vector<1x256xf32>
    %c1 = arith.constant 1 : index
    %c0_5 = arith.constant 0 : index
    %3 = vector.load %arg4[%c1, %c0_5] : memref<8x256xf32, #tpu.memory_space<vmem>>, vector<1x256xf32>
    %c2 = arith.constant 2 : index
    %c0_6 = arith.constant 0 : index
    %4 = vector.load %arg4[%c2, %c0_6] : memref<8x256xf32, #tpu.memory_space<vmem>>, vector<1x256xf32>
    %c3 = arith.constant 3 : index
    %c0_7 = arith.constant 0 : index
    %5 = vector.load %arg4[%c3, %c0_7] : memref<8x256xf32, #tpu.memory_space<vmem>>, vector<1x256xf32>
    %c4 = arith.constant 4 : index
    %c0_8 = arith.constant 0 : index
    %6 = vector.load %arg4[%c4, %c0_8] : memref<8x256xf32, #tpu.memory_space<vmem>>, vector<1x128xf32>
    %c5 = arith.constant 5 : index
    %c0_9 = arith.constant 0 : index
    %7 = vector.load %arg4[%c5, %c0_9] : memref<8x256xf32, #tpu.memory_space<vmem>>, vector<1x128xf32>
    %c6 = arith.constant 6 : index
    %c0_10 = arith.constant 0 : index
    %8 = vector.load %arg4[%c6, %c0_10] : memref<8x256xf32, #tpu.memory_space<vmem>>, vector<1x1xf32>
    %9 = arith.truncf %0 : vector<8x32xf32> to vector<8x32xbf16>
    %c0_11 = arith.constant 0 : index
    %c0_12 = arith.constant 0 : index
    %10 = vector.load %arg2[%c0_11, %c0_12] : memref<40x256xbf16, #tpu.memory_space<vmem>>, vector<32x256xbf16>
    %cst = arith.constant dense<0.000000e+00> : vector<8x256xf32>
    %11 = tpu.matmul %9, %10, %cst {dimension_numbers = #tpu.dot_dimension_numbers<[1], [0], [0], [1], [0, 0, 1, 1], [], []>} : vector<8x32xbf16>, vector<32x256xbf16>, vector<8x256xf32> -> vector<8x256xf32>
    %12 = vector.broadcast %2 : vector<1x256xf32> to vector<8x256xf32>
    %13 = arith.addf %11, %12 : vector<8x256xf32>
    %cst_13 = arith.constant dense<0.000000e+00> : vector<256xf32>
    %14 = vector.multi_reduction <add>, %13, %cst_13 [0] : vector<8x256xf32> to vector<256xf32>
    %15 = vector.shape_cast %14 : vector<256xf32> to vector<1x256xf32>
    %cst_14 = arith.constant 1.250000e-01 : f32
    %16 = vector.broadcast %cst_14 : f32 to vector<1x256xf32>
    %17 = arith.mulf %15, %16 : vector<1x256xf32>
    %18 = arith.mulf %13, %13 : vector<8x256xf32>
    %cst_15 = arith.constant dense<0.000000e+00> : vector<256xf32>
    %19 = vector.multi_reduction <add>, %18, %cst_15 [0] : vector<8x256xf32> to vector<256xf32>
    %20 = vector.shape_cast %19 : vector<256xf32> to vector<1x256xf32>
    %cst_16 = arith.constant 1.250000e-01 : f32
    %21 = vector.broadcast %cst_16 : f32 to vector<1x256xf32>
    %22 = arith.mulf %20, %21 : vector<1x256xf32>
    %23 = arith.mulf %17, %17 : vector<1x256xf32>
    %24 = arith.subf %22, %23 : vector<1x256xf32>
    %cst_17 = arith.constant 0.000000e+00 : f32
    %25 = vector.broadcast %cst_17 : f32 to vector<1x256xf32>
    %26 = arith.maximumf %24, %25 : vector<1x256xf32>
    %cst_18 = arith.constant 9.99999974E-6 : f32
    %27 = vector.broadcast %cst_18 : f32 to vector<1x256xf32>
    %28 = arith.addf %26, %27 : vector<1x256xf32>
    %29 = math.rsqrt %28 : vector<1x256xf32>
    %30 = arith.mulf %3, %29 : vector<1x256xf32>
    %31 = arith.mulf %17, %30 : vector<1x256xf32>
    %32 = arith.subf %4, %31 : vector<1x256xf32>
    %33 = vector.broadcast %30 : vector<1x256xf32> to vector<8x256xf32>
    %34 = arith.mulf %13, %33 : vector<8x256xf32>
    %35 = vector.broadcast %32 : vector<1x256xf32> to vector<8x256xf32>
    %36 = arith.addf %34, %35 : vector<8x256xf32>
    %cst_19 = arith.constant 0.000000e+00 : f32
    %37 = vector.broadcast %cst_19 : f32 to vector<8x256xf32>
    %38 = arith.maximumf %36, %37 : vector<8x256xf32>
    %39 = arith.truncf %38 : vector<8x256xf32> to vector<8x256xbf16>
    %c0_20 = arith.constant 0 : index
    %c0_21 = arith.constant 0 : index
    %40 = vector.load %arg3[%c0_20, %c0_21] : memref<256x384xbf16, #tpu.memory_space<vmem>>, vector<256x256xbf16>
    %cst_22 = arith.constant dense<0.000000e+00> : vector<8x256xf32>
    %41 = tpu.matmul %39, %40, %cst_22 {dimension_numbers = #tpu.dot_dimension_numbers<[1], [0], [0], [1], [0, 0, 1, 1], [], []>} : vector<8x256xbf16>, vector<256x256xbf16>, vector<8x256xf32> -> vector<8x256xf32>
    %42 = arith.truncf %1 : vector<8x8xf32> to vector<8x8xbf16>
    %c32 = arith.constant 32 : index
    %c0_23 = arith.constant 0 : index
    %43 = vector.load %arg2[%c32, %c0_23] : memref<40x256xbf16, #tpu.memory_space<vmem>>, vector<8x256xbf16>
    %cst_24 = arith.constant dense<0.000000e+00> : vector<8x256xf32>
    %44 = tpu.matmul %42, %43, %cst_24 {dimension_numbers = #tpu.dot_dimension_numbers<[1], [0], [0], [1], [0, 0, 1, 1], [], []>} : vector<8x8xbf16>, vector<8x256xbf16>, vector<8x256xf32> -> vector<8x256xf32>
    %45 = arith.addf %41, %44 : vector<8x256xf32>
    %46 = vector.broadcast %5 : vector<1x256xf32> to vector<8x256xf32>
    %47 = arith.addf %45, %46 : vector<8x256xf32>
    %cst_25 = arith.constant 0.000000e+00 : f32
    %48 = vector.broadcast %cst_25 : f32 to vector<8x256xf32>
    %49 = arith.maximumf %47, %48 : vector<8x256xf32>
    %50 = arith.truncf %49 : vector<8x256xf32> to vector<8x256xbf16>
    %c0_26 = arith.constant 0 : index
    %c256 = arith.constant 256 : index
    %51 = vector.load %arg3[%c0_26, %c256] : memref<256x384xbf16, #tpu.memory_space<vmem>>, vector<256x128xbf16>
    %cst_27 = arith.constant dense<0.000000e+00> : vector<8x128xf32>
    %52 = tpu.matmul %50, %51, %cst_27 {dimension_numbers = #tpu.dot_dimension_numbers<[1], [0], [0], [1], [0, 0, 1, 1], [], []>} : vector<8x256xbf16>, vector<256x128xbf16>, vector<8x128xf32> -> vector<8x128xf32>
    %53 = vector.broadcast %6 : vector<1x128xf32> to vector<8x128xf32>
    %54 = arith.addf %52, %53 : vector<8x128xf32>
    %cst_28 = arith.constant 0.000000e+00 : f32
    %55 = vector.broadcast %cst_28 : f32 to vector<8x128xf32>
    %56 = arith.maximumf %54, %55 : vector<8x128xf32>
    %57 = vector.broadcast %7 : vector<1x128xf32> to vector<8x128xf32>
    %58 = arith.mulf %56, %57 : vector<8x128xf32>
    %cst_29 = arith.constant dense<0.000000e+00> : vector<8xf32>
    %59 = vector.multi_reduction <add>, %58, %cst_29 [1] : vector<8x128xf32> to vector<8xf32>
    %60 = vector.shape_cast %59 : vector<8xf32> to vector<8x1xf32>
    %61 = vector.broadcast %8 : vector<1x1xf32> to vector<8x1xf32>
    %62 = arith.addf %60, %61 : vector<8x1xf32>
    %c0_30 = arith.constant 0 : index
    %c0_31 = arith.constant 0 : index
    %63 = vector.load %arg5[%c0_30, %c0_31] : memref<8x1xf32, #tpu.memory_space<vmem>>, vector<8x1xf32>
    tpu.vector_store %arg5[%c0_30, %c0_31], %62 {strides = array<i32>} : memref<8x1xf32, #tpu.memory_space<vmem>>, vector<8x1xf32>,
    return
  }
}

</mosaic_0001>

<bundles_post_ra>
// kernel: tpu_custom_call.1
= control target key start
LH: loop header
LB: loop body
LE: loop exit
PB: predicated region body
PF: predicated region fallthrough
CT: control target
= control target key end

     0   :  { %10 = vsyncpa [#allocation3], 0  ;;  %s1207_s0 = inlined_call_operand.hbm [shape: f32[8,32], index: 0, kind: input, shape index: {}]   ;;  %s1208_s1 = inlined_call_operand.hbm [shape: f32[8,8], index: 1, kind: input, shape index: {}]   ;;  %s1209_s2 = inlined_call_operand.hbm [shape: bf16[40,256], index: 2, kind: input, shape index: {}]   ;;  %s1210_s3 = inlined_call_operand.hbm [shape: bf16[256,384], index: 3, kind: input, shape index: {}]   ;;  %s1211_s4 = inlined_call_operand.hbm [shape: f32[8,256], index: 4, kind: input, shape index: {}]   ;;  %s1212_s5 = inlined_call_operand.vmem [shape: f32[8,1], index: 5, kind: output, shape index: {}]  }
   0x1   :  { %11 = vsyncpa [#allocation5], 0  ;;  %s29_s20 = sshll.u32 %s1208_s1, 4  ;;  %s30_s20 = int_to_ptr.hbm [resolvable:$true] %s29_s20 }
   0x2   :  { %12 = vsyncpa [#allocation8], 0  ;;  %s1126_s21 = smov [#allocation4]   ;;  %s52_s25 = sshll.u32 %s1210_s3, 4  ;;  %s53_s25 = int_to_ptr.hbm [resolvable:$true] %s52_s25 }
   0x3   :  { %s31_s22 = sshll.u32 %s1126_s21, 4  ;;  %s1127_s26 = smov [#allocation7]   ;;  %s32_s22 = int_to_ptr.vmem [resolvable:$true] %s31_s22 }
   0x4   :  { %34 = dma.hbm_to_vmem [thread:$0]  %s30_s20, 128, %s32_s22, [#allocation5]  }
   0x5   :  { %s54_s27 = sshll.u32 %s1127_s26, 4  ;;  %s1128_s28 = smov 192   ;;  %s55_s27 = int_to_ptr.vmem [resolvable:$true] %s54_s27 }
   0x6   :  { %s1129_s29 = smov 12   ;;  %s18_s1 = sshll.u32 %s1207_s0, 4  ;;  %s19_s1 = int_to_ptr.hbm [resolvable:$true] %s18_s1 }
   0x7   :  { %60 = dma.hbm_to_vmem [thread:$0]  %s53_s25, 6144, %s55_s27, [#allocation8], %s1128_s28, %s1128_s28, %s1129_s29  }
   0x8   :  { %s1130_s7 = smov [#allocation2]   ;;  %s39_s3 = sshll.u32 %s1209_s2, 4  ;;  %s40_s3 = int_to_ptr.hbm [resolvable:$true] %s39_s3 }
   0x9   :  { %s20_s8 = sshll.u32 %s1130_s7, 4  ;;  %s1131_s11 = smov [#allocation6]   ;;  %s21_s8 = int_to_ptr.vmem [resolvable:$true] %s20_s8 }
   0xa   :  { %23 = dma.hbm_to_vmem [thread:$0]  %s19_s1, 128, %s21_s8, [#allocation3]  }
   0xb   :  { %s41_s12 = sshll.u32 %s1131_s11, 4  ;;  %s1132_s13 = smov 128   ;;  %s42_s12 = int_to_ptr.vmem [resolvable:$true] %s41_s12 }
   0xc   :  { %s1133_s14 = smov 8   ;;  %s66_s0 = sshll.u32 %s1211_s4, 4  ;;  %s67_s0 = int_to_ptr.hbm [resolvable:$true] %s66_s0 }
   0xd   :  { %47 = dma.hbm_to_vmem [thread:$0]  %s40_s3, 640, %s42_s12, [#allocation5], %s1132_s13, %s1132_s13, %s1133_s14  }
   0xe   :  { %s1134_s17 = smov [#allocation9]  }
   0xf   :  { %s68_s18 = sshll.u32 %s1134_s17, 4  ;;  %s69_s18 = int_to_ptr.vmem [resolvable:$true] %s68_s18 }
  0x10   :  { %71 = dma.hbm_to_vmem [thread:$0]  %s67_s0, 256, %s69_s18, [#allocation8]  }
  0x11   :  { %1120 = dma.done.wait [#allocation3], 128  }
  0x12   :  { %1121 = vsyncadd [#allocation3], 4294967168 }
  0x13   :  { %1122 = dma.done.wait [#allocation5], 768  }
  0x14   :  { %1123 = vsyncadd [#allocation5], 4294966528 }
  0x15   :  { %1124 = dma.done.wait [#allocation8], 6400  }
  0x16   :  { %1125 = vsyncadd [#allocation8], 4294960896  ;;  %v733_v0 = vld [vmem:[#allocation6 + $0x10] sm:$0xf]  ;;  %v938_v1 = vld [vmem:[#allocation6 + $0x14] sm:$0xf0] }
  0x17   :  { %v937_v2 = vld [vmem:[#allocation6 + $0x14] sm:$0xf]  ;;  %v734_v3 = vor.u32 %v938_v1, %v733_v0  ;;  %v735_v4 = vld [vmem:[#allocation6 + $0x18] sm:$0xf0]  ;;  %v725_v5 = vld [vmem:[#allocation6] sm:$0xf] }
  0x18   :  { %v936_v6 = vld [vmem:[#allocation6 + $0x4] sm:$0xf0]  ;;  %v738_v7 = vor.u32 %v937_v2, %v735_v4  ;;  %v935_v8 = vld [vmem:[#allocation6 + $0x4] sm:$0xf]  ;;  %v727_v9 = vld [vmem:[#allocation6 + $0x8] sm:$0xf0] }
  0x19   :  { %145 = vmatpush.bf16.msra.mxu0 %v734_v3  ;;  %v726_v10 = vor.u32 %v936_v6, %v725_v5  ;;  %v93_v11 = vld [vmem:[#allocation2] sm:$0xff]  ;;  %v730_v12 = vor.u32 %v935_v8, %v727_v9  ;;  %vm135_vm0 = vcmask 261120   ;;  %v289_v15 = vld [vmem:[#allocation6 + $0x20] sm:$0xff]  ;;  %vm299_vm1 = vcmask 1043456   ;;  %v954_v24 = vld [vmem:[#allocation7 + $0xb0] sm:$0xf0] }
  0x1a   :  { %158 = vmatpush.bf16.msra.mxu1 %v738_v7  ;;  %v105_v13 = vpack.c.bf16 %v93_v11, %v93_v11  ;;  %v95_v14 = vld [vmem:[#allocation9] ss:$8 sm:$0x3]  ;;  %v291_v17 = vunpack.c.l.b16 %v289_v15  ;;  %v292_v18 = vunpack.c.h.b16 %v289_v15  ;;  %v970_v31 = vld [vmem:[#allocation7 + $0x170] sm:$0xf0]  ;;  %vm295_vm2 = vcmask 64512  }
  0x1b   :  { %v111_v16 = vperm.slane %v95_v14, 0  ;;  %v112_v19 = vperm.slane %v95_v14, 1  ;;  %v801_v23 = vld [vmem:[#allocation7 + $0xa8] sm:$0xf]  ;;  %v953_v34 = vld [vmem:[#allocation7 + $0xac] sm:$0xf] }
  0x1c   :  { %v293_v20 = vpack.c.b16 %v291_v17, %v291_v17  ;;  %v294_v21 = vpack.c.b16 %v292_v18, %v292_v18  ;;  %v802_v29 = vor.u32 %v954_v24, %v801_v23  ;;  %v865_v30 = vld [vmem:[#allocation7 + $0x168] sm:$0xf]  ;;  %v803_v35 = vld [vmem:[#allocation7 + $0xb4] sm:$0xf0]  ;;  %v969_v36 = vld [vmem:[#allocation7 + $0x16c] sm:$0xf] }
  0x1d   :  { %146 = vmatpush.bf16.msra.mxu0 %v726_v10  ;;  %v866_v33 = vor.u32 %v970_v31, %v865_v30  ;;  %v806_v39 = vor.u32 %v953_v34, %v803_v35  ;;  %v867_v40 = vld [vmem:[#allocation7 + $0x174] sm:$0xf0]  ;;  %v793_v41 = vld [vmem:[#allocation7 + $0x90] sm:$0xf]  ;;  %v952_v46 = vld [vmem:[#allocation7 + $0x98] sm:$0xf0] }
  0x1e   :  { %159 = vmatpush.bf16.msra.mxu1 %v730_v12  ;;  %v301_v27 = vsel %vm299_vm1, %v293_v20, 0  ;;  %v304_v28 = vsel %vm299_vm1, %v294_v21, 0  ;;  %492 = vmatpush.bf16.msra.mxu2 %v802_v29  ;;  %v94_v42 = vld [vmem:[#allocation4] sm:$0xff]  ;;  %v870_v45 = vor.u32 %v969_v36, %v867_v40  ;;  %v794_v51 = vor.u32 %v952_v46, %v793_v41  ;;  %v968_v52 = vld [vmem:[#allocation7 + $0x158] sm:$0xf0] }
  0x1f   :  { %505 = vmatpush.bf16.msra.mxu3 %v866_v33  ;;  %v857_v47 = vld [vmem:[#allocation7 + $0x150] sm:$0xf]  ;;  %v288_v48 = vpack.c.bf16 %v94_v42, %v94_v42  ;;  %v951_v53 = vld [vmem:[#allocation7 + $0x94] sm:$0xf]  ;;  %v795_v57 = vld [vmem:[#allocation7 + $0x9c] sm:$0xf0] }
  0x20   :  { %739 = vmatmul.msk.bf16.vlgmr.msra.gmra.mxu0 %vm135_vm0, %v105_v13  ;;  %v858_v56 = vor.u32 %v968_v52, %v857_v47  ;;  %v967_v58 = vld [vmem:[#allocation7 + $0x154] sm:$0xf]  ;;  %v798_v61 = vor.u32 %v951_v53, %v795_v57  ;;  %v859_v62 = vld [vmem:[#allocation7 + $0x15c] sm:$0xf0]  ;;  %v785_v63 = vld [vmem:[#allocation7 + $0x78] sm:$0xf] }
  0x21   :  { %740 = vmatmul.msk.bf16.vlgmr.msra.gmra.mxu1 %vm135_vm0, %v105_v13  ;;  %313 = vmatpush.bf16.msrb.mxu0 %v301_v27  ;;  %v862_v3 = vor.u32 %v967_v58, %v859_v62  ;;  %v950_v4 = vld [vmem:[#allocation7 + $0x80] sm:$0xf0]  ;;  %v849_v5 = vld [vmem:[#allocation7 + $0x138] sm:$0xf]  ;;  %v949_v11 = vld [vmem:[#allocation7 + $0x7c] sm:$0xf] }
  0x22   :  { %326 = vmatpush.bf16.msrb.mxu1 %v304_v28  ;;  %493 = vmatpush.bf16.msra.mxu2 %v794_v51  ;;  %v786_v9 = vor.u32 %v950_v4, %v785_v63  ;;  %v966_v10 = vld [vmem:[#allocation7 + $0x140] sm:$0xf0]  ;;  %v787_v15 = vld [vmem:[#allocation7 + $0x84] sm:$0xf0]  ;;  %v777_v21 = vld [vmem:[#allocation7 + $0x60] sm:$0xf] }
  0x23   :  { %506 = vmatpush.bf16.msra.mxu3 %v858_v56  ;;  %v850_v14 = vor.u32 %v966_v10, %v849_v5  ;;  %v851_v20 = vld [vmem:[#allocation7 + $0x144] sm:$0xf0]  ;;  %v841_v27 = vld [vmem:[#allocation7 + $0x120] sm:$0xf]  ;;  %v964_v30 = vld [vmem:[#allocation7 + $0x128] sm:$0xf0] }
  0x24   :  { %v947_v31 = vld [vmem:[#allocation7 + $0x64] sm:$0xf]  ;;  %v842_v36 = vor.u32 %v964_v30, %v841_v27  ;;  %v843_v41 = vld [vmem:[#allocation7 + $0x12c] sm:$0xf0]  ;;  %v769_v42 = vld [vmem:[#allocation7 + $0x48] sm:$0xf] }
  0x25   :  { %518 = vmatpush.bf16.msra.mxu0 %v806_v39  ;;  %v945_v51 = vld [vmem:[#allocation7 + $0x4c] sm:$0xf]  ;;  %v771_v52 = vld [vmem:[#allocation7 + $0x54] sm:$0xf0]  ;;  %v944_v62 = vld [vmem:[#allocation7 + $0x38] sm:$0xf0] }
  0x26   :  { %531 = vmatpush.bf16.msra.mxu1 %v870_v45  ;;  %494 = vmatpush.bf16.msra.mxu2 %v786_v9  ;;  %v774_v57 = vor.u32 %v945_v51, %v771_v52  ;;  %v961_v58 = vld [vmem:[#allocation7 + $0x10c] sm:$0xf]  ;;  %v825_v63 = vld [vmem:[#allocation7 + $0xf0] sm:$0xf]  ;;  %v943_v4 = vld [vmem:[#allocation7 + $0x34] sm:$0xf] }
  0x27   :  { %507 = vmatpush.bf16.msra.mxu3 %v850_v14  ;;  %v763_v5 = vld [vmem:[#allocation7 + $0x3c] sm:$0xf0]  ;;  %v753_v10 = vld [vmem:[#allocation7 + $0x18] sm:$0xf]  ;;  %v940_v27 = vld [vmem:[#allocation7 + $0x8] sm:$0xf0] }
  0x28   :  { %v827_v9 = vld [vmem:[#allocation7 + $0xfc] sm:$0xf0]  ;;  %v817_v14 = vld [vmem:[#allocation7 + $0xd8] sm:$0xf]  ;;  %v956_v30 = vld [vmem:[#allocation7 + $0xc8] sm:$0xf0] }
  0x29   :  { %519 = vmatpush.bf16.msra.mxu0 %v798_v61  ;;  %v761_v61 = vld [vmem:[#allocation7 + $0x30] sm:$0xf]  ;;  %vm226_vm8 = vcmask 1040384   ;;  %vm714_vm10 = vcmask 7168  }
  0x2a   :  { %532 = vmatpush.bf16.msra.mxu1 %v862_v3  ;;  %v960_v3 = vld [vmem:[#allocation7 + $0xf8] sm:$0xf0] }
  0x2b   :  { %508 = vmatpush.bf16.msra.mxu3 %v842_v36  ;;  %v811_v36 = vld [vmem:[#allocation7 + $0xcc] sm:$0xf0] }
  0x30   :  { %741 = vmatmul.msk.bf16.vlgmr.msrb.gmra.mxu0 %vm295_vm2, %v288_v48 }
  0x31   :  { %742 = vmatmul.msk.bf16.vlgmr.msrb.gmra.mxu1 %vm295_vm2, %v288_v48  ;;  %v833_v48 = vld [vmem:[#allocation7 + $0x108] sm:$0xf] }
  0x9d   :  { %v148_v22 = vpop.f32.mrf.mxu0 }
  0x9e   :  { %v1180_v25 = vadd.f32 %v148_v22, %v111_v16  ;;  %v161_v26 = vpop.f32.mrf.mxu1  ;;  %v965_v16 = vld [vmem:[#allocation7 + $0x13c] sm:$0xf] }
  0x9f   :  { %v1182_v32 = vadd.f32 %v161_v26, %v112_v19  ;;  %v790_v19 = vor.u32 %v949_v11, %v787_v15  ;;  %v854_v24 = vor.u32 %v965_v16, %v851_v20  ;;  %v948_v26 = vld [vmem:[#allocation7 + $0x68] sm:$0xf0]  ;;  %v958_v16 = vld [vmem:[#allocation7 + $0xe0] sm:$0xf0] }
  0xa0   :  { %v165_v37 = vrot.slane %v1180_v25, 4  ;;  %v179_v38 = vmul.f32 %v1180_v25, %v1180_v25  ;;  %v778_v29 = vor.u32 %v948_v26, %v777_v21  ;;  %v818_v21 = vor.u32 %v958_v16, %v817_v14  ;;  %v745_v26 = vld [vmem:[#allocation7] sm:$0xf] }
  0xa1   :  { %v171_v43 = vrot.slane %v1182_v32, 4  ;;  %v180_v44 = vmul.f32 %v1182_v32, %v1182_v32  ;;  %520 = vmatpush.bf16.msra.mxu0 %v790_v19  ;;  %533 = vmatpush.bf16.msra.mxu1 %v854_v24 }
  0xa2   :  { %v166_v49 = vadd.f32 %v165_v37, %v1180_v25  ;;  %v181_v50 = vrot.slane %v179_v38, 4  ;;  %v779_v37 = vld [vmem:[#allocation7 + $0x6c] sm:$0xf0]  ;;  %495 = vmatpush.bf16.msra.mxu2 %v778_v29 }
  0xa3   :  { %v172_v54 = vadd.f32 %v171_v43, %v1182_v32  ;;  %v187_v55 = vrot.slane %v180_v44, 4  ;;  %v782_v40 = vor.u32 %v947_v31, %v779_v37  ;;  %v946_v43 = vld [vmem:[#allocation7 + $0x50] sm:$0xf0]  ;;  %v939_v31 = vld [vmem:[#allocation7 + $0x4] sm:$0xf] }
  0xa4   :  { %v167_v59 = vrot.slane %v166_v49, 2  ;;  %v182_v60 = vadd.f32 %v181_v50, %v179_v38  ;;  %v963_v38 = vld [vmem:[#allocation7 + $0x124] sm:$0xf]  ;;  %v770_v47 = vor.u32 %v946_v43, %v769_v42 }
  0xa5   :  { %v173_v0 = vrot.slane %v172_v54, 2  ;;  %v188_v1 = vadd.f32 %v187_v55, %v180_v44  ;;  %v150_v2 = vpop.f32.mrf.mxu0  ;;  %v846_v46 = vor.u32 %v963_v38, %v843_v41  ;;  %521 = vmatpush.bf16.msra.mxu0 %v782_v40 }
  0xa6   :  { %v168_v6 = vadd.f32 %v167_v59, %v166_v49  ;;  %v183_v7 = vrot.slane %v182_v60, 2  ;;  %v163_v8 = vpop.f32.mrf.mxu1  ;;  %v962_v49 = vld [vmem:[#allocation7 + $0x110] sm:$0xf0]  ;;  %v835_v59 = vld [vmem:[#allocation7 + $0x114] sm:$0xf0]  ;;  %496 = vmatpush.bf16.msra.mxu2 %v770_v47  ;;  %v762_v2 = vor.u32 %v944_v62, %v761_v61 }
  0xa7   :  { %v174_v12 = vadd.f32 %v173_v0, %v172_v54  ;;  %v189_v13 = vrot.slane %v188_v1, 2  ;;  %v834_v50 = vor.u32 %v962_v49, %v833_v48  ;;  %534 = vmatpush.bf16.msra.mxu1 %v846_v46  ;;  %v959_v8 = vld [vmem:[#allocation7 + $0xf4] sm:$0xf]  ;;  %v933_v49 = vld [vmem:[#allocation7 + $0x170] sm:$0xf] }
  0xa8   :  { %v169_v17 = vrot.slane %v168_v6, 1  ;;  %v184_v18 = vadd.f32 %v183_v7, %v182_v60  ;;  %v838_v60 = vor.u32 %v961_v58, %v835_v59  ;;  %v766_v7 = vor.u32 %v943_v4, %v763_v5  ;;  %v97_v61 = vld [vmem:[#allocation9 + $0x1] ss:$8 sm:$0x3] }
  0xa9   :  { %v175_v22 = vrot.slane %v174_v12, 1  ;;  %v190_v23 = vadd.f32 %v189_v13, %v188_v1  ;;  %509 = vmatpush.bf16.msra.mxu3 %v834_v50  ;;  %522 = vmatpush.bf16.msra.mxu0 %v774_v57  ;;  %v942_v13 = vld [vmem:[#allocation7 + $0x20] sm:$0xf0]  ;;  %v986_v50 = vld [vmem:[#allocation7 + $0x178] sm:$0xf0] }
  0xaa   :  { %v185_v28 = vrot.slane %v184_v18, 1  ;;  %v170_v33 = vadd.f32 %v169_v17, %v168_v6  ;;  %v826_v6 = vor.u32 %v960_v3, %v825_v63  ;;  %497 = vmatpush.bf16.msra.mxu2 %v762_v2  ;;  %v754_v15 = vor.u32 %v942_v13, %v753_v10  ;;  %v941_v17 = vld [vmem:[#allocation7 + $0x1c] sm:$0xf]  ;;  %v99_v4 = vld [vmem:[#allocation9 + $0x2] ss:$8 sm:$0x3] }
  0xab   :  { %v176_v34 = vadd.f32 %v175_v22, %v174_v12  ;;  %v191_v35 = vrot.slane %v190_v23, 1  ;;  %535 = vmatpush.bf16.msra.mxu1 %v838_v60  ;;  %v830_v12 = vor.u32 %v959_v8, %v827_v9  ;;  %v957_v22 = vld [vmem:[#allocation7 + $0xdc] sm:$0xf]  ;;  %v934_v52 = vor.u32 %v986_v50, %v933_v49  ;;  %v885_v49 = vld [vmem:[#allocation7 + $0x50] sm:$0xf] }
  0xac   :  { %v186_v39 = vadd.f32 %v185_v28, %v184_v18  ;;  %v1194_v53 = vmul.f32 0.125, %v170_v33  ;;  %v755_v18 = vld [vmem:[#allocation7 + $0x24] sm:$0xf0]  ;;  %v809_v28 = vld [vmem:[#allocation7 + $0xc0] sm:$0xf] }
  0xad   :  { %v1192_v44 = vmul.f32 0.125, %v176_v34  ;;  %v192_v45 = vadd.f32 %v191_v35, %v190_v23  ;;  %510 = vmatpush.bf16.msra.mxu3 %v826_v6  ;;  %v819_v23 = vld [vmem:[#allocation7 + $0xe4] sm:$0xf0]  ;;  %523 = vmatpush.bf16.msra.mxu0 %v766_v7  ;;  %v758_v24 = vor.u32 %v941_v17, %v755_v18  ;;  %v747_v33 = vld [vmem:[#allocation7 + $0xc] sm:$0xf0]  ;;  %v746_v34 = vor.u32 %v940_v27, %v745_v26 }
  0xae   :  { %v193_v54 = vmul.f32 0.125, %v186_v39  ;;  %v195_v0 = vmul.f32 %v1194_v53, %v1194_v53  ;;  %v822_v29 = vor.u32 %v957_v22, %v819_v23  ;;  %498 = vmatpush.bf16.msra.mxu2 %v754_v15  ;;  %v955_v35 = vld [vmem:[#allocation7 + $0xc4] sm:$0xf]  ;;  %v810_v38 = vor.u32 %v956_v30, %v809_v28  ;;  %v984_v22 = vld [vmem:[#allocation7 + $0x148] sm:$0xf0] }
  0xaf   :  { %v194_v55 = vmul.f32 0.125, %v192_v45  ;;  %v196_v56 = vmul.f32 %v1192_v44, %v1192_v44  ;;  %536 = vmatpush.bf16.msra.mxu1 %v830_v12  ;;  %v750_v39 = vor.u32 %v939_v31, %v747_v33  ;;  %v814_v41 = vor.u32 %v955_v35, %v811_v36  ;;  %v921_v28 = vld [vmem:[#allocation7 + $0x128] sm:$0xf]  ;;  %v893_v30 = vld [vmem:[#allocation7 + $0x80] sm:$0xf] }
  0xb0   :  { %v197_v19 = vsub.f32 %v193_v54, %v195_v0  ;;  %v976_v33 = vld [vmem:[#allocation7 + $0x88] sm:$0xf0]  ;;  %v982_v35 = vld [vmem:[#allocation7 + $0x118] sm:$0xf0] }
  0xb1   :  { %v198_v1 = vsub.f32 %v194_v55, %v196_v56  ;;  %511 = vmatpush.bf16.msra.mxu3 %v818_v21  ;;  %524 = vmatpush.bf16.msra.mxu0 %v758_v24  ;;  %v978_v21 = vld [vmem:[#allocation7 + $0xb8] sm:$0xf0]  ;;  %v977_v24 = vld [vmem:[#allocation7 + $0xa0] sm:$0xf0]  ;;  %v894_v36 = vor.u32 %v976_v33, %v893_v30 }
  0xb2   :  { %v199_v37 = vmax.f32 %v197_v19, 0.0  ;;  %499 = vmatpush.bf16.msra.mxu2 %v746_v34  ;;  %v901_v19 = vld [vmem:[#allocation7 + $0xb0] sm:$0xf]  ;;  %v974_v50 = vld [vmem:[#allocation7 + $0x58] sm:$0xf0] }
  0xb3   :  { %v200_v11 = vmax.f32 %v198_v1, 0.0  ;;  %537 = vmatpush.bf16.msra.mxu1 %v822_v29  ;;  %v902_v23 = vor.u32 %v978_v21, %v901_v19  ;;  %v983_v29 = vld [vmem:[#allocation7 + $0x130] sm:$0xf0]  ;;  %v917_v34 = vld [vmem:[#allocation7 + $0x110] sm:$0xf] }
  0xb4   :  { %v201_v40 = vadd.f32 1e-05, %v199_v37  ;;  %v922_v31 = vor.u32 %v983_v29, %v921_v28  ;;  %v889_v37 = vld [vmem:[#allocation7 + $0x68] sm:$0xf]  ;;  %v103_v28 = vld [vmem:[#allocation9 + $0x5] ss:$0 sm:$0xff] }
  0xb5   :  { %v202_v20 = vadd.f32 1e-05, %v200_v11  ;;  %512 = vmatpush.bf16.msra.mxu3 %v810_v38  ;;  %525 = vmatpush.bf16.msra.mxu0 %v750_v39  ;;  %v975_v38 = vld [vmem:[#allocation7 + $0x70] sm:$0xf0]  ;;  %v918_v39 = vor.u32 %v982_v35, %v917_v34  ;;  %v104_v33 = vld [vmem:[#allocation9 + $0x6] ss:$0 sm:$0xff] }
  0xb6   :  { %vm209_vm7 = vweird.f32 %v201_v40  ;;  %683 = vmatpush.bf16.msrb.mxu2 %v902_v23  ;;  %v102_v23 = vld [vmem:[#allocation9 + $0x4] ss:$0 sm:$0xff] }
  0xb7   :  { %996 = vrsqrt.f32 %v202_v20  ;;  %538 = vmatpush.bf16.msra.mxu1 %v814_v41  ;;  %vm219_vm4 = vweird.f32 %v202_v20  ;;  %v315_v41 = vpop.f32.mrf.mxu0 }
  0xb8   :  { %998 = vrsqrt.f32 %v201_v40 }
  0xb9   :  { %696 = vmatpush.bf16.msrb.mxu3 %v934_v52  ;;  %v909_v52 = vld [vmem:[#allocation7 + $0xe0] sm:$0xf] }
  0xbd   :  { %v997_v42 = vpop.eup %996 }
  0xbe   :  { %v214_v43 = vmul.f32 %v997_v42, %v202_v20  ;;  %v999_v46 = vpop.eup %998  ;;  %vm220_vm3 = vweird.f32 %v997_v42 }
  0xbf   :  { %v204_v48 = vmul.f32 %v999_v46, %v201_v40  ;;  %vm221_vm5 = vmor %vm219_vm4, %vm220_vm3  ;;  %vm210_vm6 = vweird.f32 %v999_v46  ;;  %v890_v40 = vor.u32 %v975_v38, %v889_v37 }
  0xc0   :  { %v215_v45 = vmul.f32 %v997_v42, %v214_v43  ;;  %vm211_vm9 = vmor %vm209_vm7, %vm210_vm6  ;;  %v317_v43 = vpop.f32.mrf.mxu0 }
  0xc1   :  { %v205_v54 = vmul.f32 %v999_v46, %v204_v48 }
  0xc2   :  { %v216_v47 = vmul.f32 0.5, %v215_v45 }
  0xc3   :  { %v206_v56 = vmul.f32 0.5, %v205_v54  ;;  %v980_v54 = vld [vmem:[#allocation7 + $0xe8] sm:$0xf0] }
  0xc4   :  { %v217_v51 = vsub.f32 1.5, %v216_v47  ;;  %v981_v47 = vld [vmem:[#allocation7 + $0x100] sm:$0xf0] }
  0xc5   :  { %v207_v58 = vsub.f32 1.5, %v206_v56  ;;  %v881_v56 = vld [vmem:[#allocation7 + $0x38] sm:$0xf] }
  0xc6   :  { %v218_v55 = vmul.f32 %v997_v42, %v217_v51  ;;  %v886_v51 = vor.u32 %v974_v50, %v885_v49 }
  0xc7   :  { %v208_v60 = vmul.f32 %v999_v46, %v207_v58 }
  0xc8   :  { %v222_v57 = vsel %vm221_vm5, %v997_v42, %v218_v55  ;;  %v328_v42 = vpop.f32.mrf.mxu1  ;;  %v910_v55 = vor.u32 %v980_v54, %v909_v52 }
  0xc9   :  { %v225_v59 = vrot.slane %v222_v57, 7  ;;  %v212_v62 = vsel %vm211_vm9, %v999_v46, %v208_v60  ;;  %v913_v46 = vld [vmem:[#allocation7 + $0xf8] sm:$0xf]  ;;  %v973_v57 = vld [vmem:[#allocation7 + $0x40] sm:$0xf0] }
  0xca   :  { %v914_v48 = vor.u32 %v981_v47, %v913_v46  ;;  %v882_v58 = vor.u32 %v973_v57, %v881_v56  ;;  %v979_v60 = vld [vmem:[#allocation7 + $0xd0] sm:$0xf0] }
  0xcb   :  { %v227_v63 = vsel %vm226_vm8, %v212_v62, %v225_v59  ;;  %v905_v59 = vld [vmem:[#allocation7 + $0xc8] sm:$0xf]  ;;  %v877_v62 = vld [vmem:[#allocation7 + $0x20] sm:$0xf] }
  0xcc   :  { %v229_v0 = vmul.f32 %v227_v63, %v97_v61  ;;  %v906_v61 = vor.u32 %v979_v60, %v905_v59  ;;  %v972_v63 = vld [vmem:[#allocation7 + $0x28] sm:$0xf0] }
  0xce   :  { %v231_v1 = vperm.slane %v229_v0, 0  ;;  %v232_v2 = vperm.slane %v229_v0, 1  ;;  %v878_v0 = vor.u32 %v972_v63, %v877_v62 }
  0xd0   :  { %v236_v3 = vmul.f32 %v232_v2, %v1192_v44  ;;  %v235_v5 = vmul.f32 %v231_v1, %v1194_v53  ;;  %v243_v9 = vmul.f32 %v231_v1, %v1180_v25  ;;  %v244_v11 = vmul.f32 %v232_v2, %v1182_v32  ;;  %v929_v44 = vld [vmem:[#allocation7 + $0x158] sm:$0xf]  ;;  %v985_v53 = vld [vmem:[#allocation7 + $0x160] sm:$0xf0]  ;;  %v925_v25 = vld [vmem:[#allocation7 + $0x140] sm:$0xf]  ;;  %v330_v45 = vpop.f32.mrf.mxu1 }
  0xd1   :  { %v930_v20 = vor.u32 %v985_v53, %v929_v44  ;;  %v897_v32 = vld [vmem:[#allocation7 + $0x98] sm:$0xf]  ;;  %v926_v26 = vor.u32 %v984_v22, %v925_v25  ;;  %v873_v1 = vld [vmem:[#allocation7 + $0x8] sm:$0xf]  ;;  %v971_v2 = vld [vmem:[#allocation7 + $0x10] sm:$0xf0] }
  0xd2   :  { %v239_v6 = vrot.slane %v236_v3, 7  ;;  %v898_v27 = vor.u32 %v977_v24, %v897_v32  ;;  %v874_v3 = vor.u32 %v971_v2, %v873_v1 }
  0xd3   :  { %697 = vmatpush.bf16.msrb.mxu3 %v930_v20 }
  0xd4   :  { %v240_v7 = vsel %vm226_vm8, %v235_v5, %v239_v6  ;;  %684 = vmatpush.bf16.msrb.mxu2 %v898_v27 }
  0xd5   :  { %v242_v8 = vsub.f32 %v99_v4, %v240_v7  ;;  %v101_v4 = vld [vmem:[#allocation9 + $0x3] ss:$8 sm:$0x3] }
  0xd7   :  { %v246_v10 = vperm.slane %v242_v8, 0  ;;  %v247_v12 = vperm.slane %v242_v8, 1  ;;  %698 = vmatpush.bf16.msrb.mxu3 %v926_v26  ;;  %v546_v8 = vperm.slane %v101_v4, 1 }
  0xd8   :  { %685 = vmatpush.bf16.msrb.mxu2 %v894_v36 }
  0xd9   :  { %v250_v13 = vadd.f32 %v246_v10, %v243_v9  ;;  %v251_v14 = vadd.f32 %v247_v12, %v244_v11 }
  0xdb   :  { %v252_v15 = vmax.f32 %v250_v13, 0.0  ;;  %v253_v16 = vmax.f32 %v251_v14, 0.0  ;;  %699 = vmatpush.bf16.msrb.mxu3 %v922_v31  ;;  %v545_v14 = vperm.slane %v101_v4, 0 }
  0xdc   :  { %686 = vmatpush.bf16.msrb.mxu2 %v890_v40 }
  0xdd   :  { %v254_v17 = vpack.c.bf16 %v252_v15, %v252_v15  ;;  %v255_v18 = vpack.c.bf16 %v253_v16, %v253_v16 }
  0xdf   :  { %500 = vmatmul.bf16.vlgmr.msra.gmra.mxu2 %v254_v17  ;;  %513 = vmatmul.bf16.vlgmr.msra.gmra.mxu3 %v255_v18 }
  0xe0   :  { %526 = vmatmul.bf16.vlgmr.msra.gmra.mxu0 %v254_v17  ;;  %539 = vmatmul.bf16.vlgmr.msra.gmra.mxu1 %v255_v18 }
  0xe1   :  { %700 = vmatpush.bf16.msrb.mxu3 %v918_v39  ;;  %687 = vmatpush.bf16.msrb.mxu2 %v886_v51 }
  0xe5   :  { %701 = vmatpush.bf16.msrb.mxu3 %v914_v48  ;;  %688 = vmatpush.bf16.msrb.mxu2 %v882_v58 }
  0xe9   :  { %702 = vmatpush.bf16.msrb.mxu3 %v910_v55  ;;  %689 = vmatpush.bf16.msrb.mxu2 %v878_v0 }
  0xed   :  { %703 = vmatpush.bf16.msrb.mxu3 %v906_v61  ;;  %690 = vmatpush.bf16.msrb.mxu2 %v874_v3 }
 0x15d   :  { %v527_v5 = vpop.f32.mrf.mxu0  ;;  %v540_v6 = vpop.f32.mrf.mxu1 }
 0x15e   :  { %v528_v7 = vadd.f32 %v527_v5, %v328_v42 }
 0x160   :  { %v541_v9 = vadd.f32 %v540_v6, %v528_v7 }
 0x162   :  { %v550_v10 = vadd.f32 %v546_v8, %v541_v9  ;;  %v501_v11 = vpop.f32.mrf.mxu2  ;;  %v514_v12 = vpop.f32.mrf.mxu3 }
 0x163   :  { %v502_v13 = vadd.f32 %v501_v11, %v315_v41 }
 0x164   :  { %v552_v15 = vmax.f32 %v550_v10, 0.0 }
 0x165   :  { %v515_v16 = vadd.f32 %v514_v12, %v502_v13  ;;  %v529_v17 = vpop.f32.mrf.mxu0  ;;  %v542_v18 = vpop.f32.mrf.mxu1 }
 0x166   :  { %v554_v44 = vpack.c.bf16 %v552_v15, %v552_v15 }
 0x167   :  { %v549_v53 = vadd.f32 %v545_v14, %v515_v16 }
 0x168   :  { %704 = vmatmul.bf16.vlgmr.msrb.gmra.mxu3 %v554_v44 }
 0x169   :  { %v551_v19 = vmax.f32 %v549_v53, 0.0 }
 0x16a   :  { %v503_v20 = vpop.f32.mrf.mxu2  ;;  %v516_v21 = vpop.f32.mrf.mxu3 }
 0x16b   :  { %v553_v25 = vpack.c.bf16 %v551_v19, %v551_v19 }
 0x16d   :  { %691 = vmatmul.bf16.vlgmr.msrb.gmra.mxu2 %v553_v25 }
 0x1eb   :  { %v705_v22 = vpop.f32.mrf.mxu3 }
 0x1f0   :  { %v692_v32 = vpop.f32.mrf.mxu2 }
 0x1f1   :  { %v693_v24 = vadd.f32 %v692_v32, %v102_v23 }
 0x1f3   :  { %v707_v26 = vpop.f32.mrf.mxu3  ;;  %v706_v27 = vadd.f32 %v705_v22, %v693_v24 }
 0x1f5   :  { %v709_v29 = vmax.f32 %v706_v27, 0.0 }
 0x1f7   :  { %v710_v30 = vmul.f32 %v709_v29, %v103_v28 }
 0x1f8   :  { %v694_v31 = vpop.f32.mrf.mxu2 }
 0x1f9   :  { %711 = vadd.xlane.f32.xlu0 %v710_v30 }
 0x26c   :  { %v712_v34 = vpop.xlane.xlu0 %711 }
 0x26d   :  { %v713_v35 = vadd.f32 %v712_v34, %v104_v33 }
 0x26f   :  { %715 = vst.msk [vmem:[%s1212_s5] sm:$0xff] %vm714_vm10, %v713_v35 }
 0x270   :  { %720 = vsyncpa [#allocation3], 1 }
 0x271   :  { %721 = vsyncpa [#allocation5], 1 }
 0x272   :  { %722 = vsyncpa [#allocation8], 1 }

</bundles_post_ra>
